<compile_context>
chip_gen: v6e
topology: v6e:2x2x1
jax: 0.10.0
libtpu: 0.0.40
codegen_flags: <defaults>
</compile_context>

<pallas_src>
import jax
import jax.numpy as jnp
from jax import lax
from jax.experimental import pallas as pl
from jax.experimental.pallas import tpu as pltpu


def face_classifier_kernel(x_ref, wproj_ref, wclf_ref, feat_ref, out_ref,
                           fscr_ref):
    # Grid = (batch tiles i, class tiles j); j is innermost.
    # x_ref:     (TB, K)      bf16  flattened NCHW batch tile, K = C*H*W
    # wproj_ref: (K, F_pad)   bf16  stand-in backbone proj weight (1/HW folded)
    # wclf_ref:  (F_pad, TN)  bf16  weight_norm effective weight tile (transposed)
    # feat_ref:  (TB, F_pad)  f32   L2-normalized embeddings (revisited over j)
    # out_ref:   (TB, TN)     f32   logits tile
    # fscr_ref:  (TB, F_pad)  bf16  VMEM scratch: normalized feats reused over j
    j = pl.program_id(1)

    @pl.when(j == 0)
    def _():
        # Fused GAP + projection: one MXU matmul with large K.
        feats = jnp.dot(x_ref[...], wproj_ref[...],
                        preferred_element_type=jnp.float32)        # (TB, F_pad)
        # F.normalize(features, p=2, dim=1, eps=1e-12) via one EUP rsqrt.
        sq = jnp.sum(feats * feats, axis=-1, keepdims=True)        # (TB, 1)
        feats_n = feats * lax.rsqrt(jnp.maximum(sq, 1e-24))
        feat_ref[...] = feats_n
        fscr_ref[...] = feats_n.astype(jnp.bfloat16)

    # Classifier tile: logits = feats_n @ W_eff^T (W_eff pre-folded, bf16 MXU).
    out_ref[...] = jnp.dot(fscr_ref[...], wclf_ref[...],
                           preferred_element_type=jnp.float32)


def _round_up(x, m):
    return ((x + m - 1) // m) * m


def _pick_batch_tile(B, sublane=16, min_steps=2, max_tb=128):
    """Sublane-dense batch tile with >= min_steps grid steps, bounded padding."""
    if B <= max_tb:
        tb = _round_up(pl.cdiv(B, min_steps), sublane)
    else:
        n_tiles = pl.cdiv(B, max_tb)
        tb = _round_up(pl.cdiv(B, n_tiles), sublane)
    return tb


def face_classifier_forward(x_nchw, w_proj, v, g, return_features=False):
    """x_nchw: (B, C, H, W) f32.  Returns logits (B, NC) or features (B, F)."""
    B, C, H, W = x_nchw.shape
    HW = H * W
    K = C * HW
    F_feat = w_proj.shape[1]
    NC = v.shape[0]

    F_pad = _round_up(F_feat, 128)

    # --- stand-in backbone: fold GAP's 1/HW into an expanded (K, F) weight.
    # TODO(synk): the real backbone is an arbitrary external model (its _fc is
    # replaced by Identity); only a synthetic GAP+linear extractor is modeled.
    w_big = jnp.repeat(w_proj / HW, HW, axis=0)                        # (K, F)
    w_proj_p = jnp.pad(
        w_big, ((0, 0), (0, F_pad - F_feat))).astype(jnp.bfloat16)

    # --- weight_norm(dim=0) effective weight is input-independent: fold g/||v||
    # once in the wrapper, store transposed (F, NC), zero-pad, bf16 for the MXU.
    v_norm = jnp.sqrt(jnp.sum(v * v, axis=1, keepdims=True))           # (NC, 1)
    w_eff_t = (v * (g.reshape(NC, 1) / v_norm)).T                      # (F, NC)

    # Class tiling: lane-dense TN that exactly divides the padded class count.
    NC_pad = _round_up(NC, 128)
    n_j = pl.cdiv(NC_pad, 2048)
    TN = _round_up(pl.cdiv(NC_pad, n_j), 128)
    NC_tot = n_j * TN
    w_clf_p = jnp.pad(
        w_eff_t, ((0, F_pad - F_feat), (0, NC_tot - NC))).astype(jnp.bfloat16)

    # --- activations: pure reshape NCHW -> (B, C*H*W); bf16 halves x traffic.
    # TODO(synk): for large images, tile K with an inner "arbitrary" grid axis
    # accumulating the projection in VMEM scratch (demo spatial size is small).
    x = x_nchw.reshape(B, K).astype(jnp.bfloat16)

    # Batch tile: 256 cap on v6e (fills the 256x256 MXU M dim), 128 elsewhere;
    # always a multiple of 16 (bf16 sublane packing) and >= 2 grid steps so
    # both v7x TensorCores get work.
    try:
        kind = jax.devices()[0].device_kind.lower()
    except Exception:
        kind = ""
    max_tb = 256 if "v6" in kind else 128
    TB = _pick_batch_tile(B, sublane=16, min_steps=2, max_tb=max_tb)
    n_b = max(pl.cdiv(B, TB), 2)
    B_pad = n_b * TB
    if B_pad != B:
        x = jnp.pad(x, ((0, B_pad - B), (0, 0)))

    grid = (n_b, n_j)

    # Explicit VMEM budget: double-buffered ins/outs + scratch, with headroom.
    vmem_est = 2 * (TB * K * 2 + K * F_pad * 2 + F_pad * TN * 2
                    + TB * F_pad * 4 + TB * TN * 4) + TB * F_pad * 2
    vmem_limit = int(min(max(2 * vmem_est, 16 * 1024 * 1024), 48 * 1024 * 1024))

    feats, logits = pl.pallas_call(
        face_classifier_kernel,
        grid=grid,
        in_specs=[
            pl.BlockSpec((TB, K), lambda i, j: (i, 0)),        # x (const over j)
            pl.BlockSpec((K, F_pad), lambda i, j: (0, 0)),     # proj weight
            pl.BlockSpec((F_pad, TN), lambda i, j: (0, j)),    # clf weight tile
        ],
        out_specs=(
            pl.BlockSpec((TB, F_pad), lambda i, j: (i, 0)),    # embeddings
            pl.BlockSpec((TB, TN), lambda i, j: (i, j)),       # logits tile
        ),
        out_shape=(
            jax.ShapeDtypeStruct((B_pad, F_pad), jnp.float32),
            jax.ShapeDtypeStruct((B_pad, NC_tot), jnp.float32),
        ),
        scratch_shapes=[pltpu.VMEM((TB, F_pad), jnp.bfloat16)],
        compiler_params=pltpu.CompilerParams(
            dimension_semantics=("parallel", "arbitrary"),
            vmem_limit_bytes=vmem_limit),
    )(x, w_proj_p, w_clf_p)

    feats = feats[:B, :F_feat]
    logits = logits[:B, :NC]
    return feats if return_features else logits


if __name__ == "__main__":
    key = jax.random.PRNGKey(0)
    B, C, H, W = 2, 4, 16, 16          # small NCHW input
    num_features, num_classes = 32, 500

    k1, k2, k3 = jax.random.split(key, 3)
    x = jax.random.normal(k1, (B, C, H, W), jnp.float32)
    w_proj = jax.random.normal(k2, (C, num_features), jnp.float32) * 0.1
    v = jax.random.normal(k3, (num_classes, num_features), jnp.float32) * 0.05
    # PyTorch weight_norm init: g = per-row L2 norm of the original weight,
    # so the effective weight equals the original weight at init.
    g = jnp.sqrt(jnp.sum(v * v, axis=1))

    logits = jax.block_until_ready(face_classifier_forward(x, w_proj, v, g))
    feats_out = jax.block_until_ready(
        face_classifier_forward(x, w_proj, v, g, return_features=True))

    # Pure-JAX f32 reference.
    pooled = jnp.mean(x.reshape(B, C, H * W), axis=-1)
    feats_ref = pooled @ w_proj
    feats_n = feats_ref / jnp.maximum(
        jnp.linalg.norm(feats_ref, axis=1, keepdims=True), 1e-12)
    w_eff = v * (g[:, None] / jnp.linalg.norm(v, axis=1, keepdims=True))
    ref_logits = feats_n @ w_eff.T

    assert logits.shape == (B, num_classes)
    assert feats_out.shape == (B, num_features)
    # bf16 MXU inputs -> relaxed tolerance vs the f32 reference.
    assert jnp.allclose(feats_out, feats_n, atol=3e-2, rtol=3e-2)
    assert jnp.allclose(logits, ref_logits, atol=3e-2, rtol=3e-2)

    print("KERNEL_OK")
</pallas_src>

<mosaic_0001>
module attributes {stable_mosaic.version = 11 : i64} {
  func.func @face_classifier_kernel(%arg0: i32, %arg1: i32, %arg2: memref<16x1024xbf16, #tpu.memory_space<vmem>>, %arg3: memref<1024x128xbf16, #tpu.memory_space<vmem>>, %arg4: memref<128x512xbf16, #tpu.memory_space<vmem>>, %arg5: memref<16x128xf32, #tpu.memory_space<vmem>>, %arg6: memref<16x512xf32, #tpu.memory_space<vmem>>, %arg7: memref<16x128xbf16, #tpu.memory_space<vmem>>) attributes {dimension_semantics = [#tpu.dimension_semantics<parallel>, #tpu.dimension_semantics<arbitrary>], iteration_bounds = array<i64: 2, 1>, scalar_prefetch = 0 : i64, scratch_operands = 1 : i64, tpu.core_type = #tpu.core_type<tc>, window_params = [{transform_indices = @transform_0, window_bounds = array<i64: 16, 1024>}, {pipeline_mode = #tpu.pipeline_mode<synchronous>, transform_indices = @transform_1, window_bounds = array<i64: 1024, 128>}, {transform_indices = @transform_2, window_bounds = array<i64: 128, 512>}, {transform_indices = @transform_3, window_bounds = array<i64: 16, 128>}, {transform_indices = @transform_4, window_bounds = array<i64: 16, 512>}]} {
    %c0_i32 = arith.constant 0 : i32
    %0 = arith.cmpi eq, %arg1, %c0_i32 : i32
    %1 = arith.extui %0 : i1 to i32
    %c0_i32_0 = arith.constant 0 : i32
    %2 = arith.cmpi ne, %1, %c0_i32_0 : i32
    scf.if %2 {
      %c0_6 = arith.constant 0 : index
      %c0_7 = arith.constant 0 : index
      %7 = vector.load %arg2[%c0_6, %c0_7] : memref<16x1024xbf16, #tpu.memory_space<vmem>>, vector<16x1024xbf16>
      %c0_8 = arith.constant 0 : index
      %c0_9 = arith.constant 0 : index
      %8 = vector.load %arg3[%c0_8, %c0_9] : memref<1024x128xbf16, #tpu.memory_space<vmem>>, vector<1024x128xbf16>
      %cst_10 = arith.constant dense<0.000000e+00> : vector<16x128xf32>
      %9 = tpu.matmul %7, %8, %cst_10 {dimension_numbers = #tpu.dot_dimension_numbers<[1], [0], [0], [1], [0, 0, 1, 1], [], []>} : vector<16x1024xbf16>, vector<1024x128xbf16>, vector<16x128xf32> -> vector<16x128xf32>
      %10 = arith.mulf %9, %9 : vector<16x128xf32>
      %cst_11 = arith.constant dense<0.000000e+00> : vector<16xf32>
      %11 = vector.multi_reduction <add>, %10, %cst_11 [1] : vector<16x128xf32> to vector<16xf32>
      %12 = vector.shape_cast %11 : vector<16xf32> to vector<16x1xf32>
      %cst_12 = arith.constant 1.000000e-24 : f32
      %13 = vector.broadcast %cst_12 : f32 to vector<16x1xf32>
      %14 = arith.maximumf %12, %13 : vector<16x1xf32>
      %15 = math.rsqrt %14 : vector<16x1xf32>
      %16 = vector.broadcast %15 : vector<16x1xf32> to vector<16x128xf32>
      %17 = arith.mulf %9, %16 : vector<16x128xf32>
      %c0_13 = arith.constant 0 : index
      %c0_14 = arith.constant 0 : index
      %18 = vector.load %arg5[%c0_13, %c0_14] : memref<16x128xf32, #tpu.memory_space<vmem>>, vector<16x128xf32>
      tpu.vector_store %arg5[%c0_13, %c0_14], %17 {strides = array<i32>} : memref<16x128xf32, #tpu.memory_space<vmem>>, vector<16x128xf32>,
      %19 = arith.truncf %17 : vector<16x128xf32> to vector<16x128xbf16>
      %c0_15 = arith.constant 0 : index
      %c0_16 = arith.constant 0 : index
      %20 = vector.load %arg7[%c0_15, %c0_16] : memref<16x128xbf16, #tpu.memory_space<vmem>>, vector<16x128xbf16>
      tpu.vector_store %arg7[%c0_15, %c0_16], %19 {strides = array<i32>} : memref<16x128xbf16, #tpu.memory_space<vmem>>, vector<16x128xbf16>,
    } else {
    }
    %c0 = arith.constant 0 : index
    %c0_1 = arith.constant 0 : index
    %3 = vector.load %arg7[%c0, %c0_1] : memref<16x128xbf16, #tpu.memory_space<vmem>>, vector<16x128xbf16>
    %c0_2 = arith.constant 0 : index
    %c0_3 = arith.constant 0 : index
    %4 = vector.load %arg4[%c0_2, %c0_3] : memref<128x512xbf16, #tpu.memory_space<vmem>>, vector<128x512xbf16>
    %cst = arith.constant dense<0.000000e+00> : vector<16x512xf32>
    %5 = tpu.matmul %3, %4, %cst {dimension_numbers = #tpu.dot_dimension_numbers<[1], [0], [0], [1], [0, 0, 1, 1], [], []>} : vector<16x128xbf16>, vector<128x512xbf16>, vector<16x512xf32> -> vector<16x512xf32>
    %c0_4 = arith.constant 0 : index
    %c0_5 = arith.constant 0 : index
    %6 = vector.load %arg6[%c0_4, %c0_5] : memref<16x512xf32, #tpu.memory_space<vmem>>, vector<16x512xf32>
    tpu.vector_store %arg6[%c0_4, %c0_5], %5 {strides = array<i32>} : memref<16x512xf32, #tpu.memory_space<vmem>>, vector<16x512xf32>,
    return
  }
  func.func @transform_0(%arg0: i32, %arg1: i32) -> (i32, i32) {
    %c0_i32 = arith.constant 0 : i32
    %c0_i32_0 = arith.constant 0 : i32
    return %arg0, %c0_i32 : i32, i32
  }
  func.func @transform_1(%arg0: i32, %arg1: i32) -> (i32, i32) {
    %c0_i32 = arith.constant 0 : i32
    %c0_i32_0 = arith.constant 0 : i32
    %c0_i32_1 = arith.constant 0 : i32
    return %c0_i32, %c0_i32_0 : i32, i32
  }
  func.func @transform_2(%arg0: i32, %arg1: i32) -> (i32, i32) {
    %c0_i32 = arith.constant 0 : i32
    %c0_i32_0 = arith.constant 0 : i32
    return %c0_i32, %arg1 : i32, i32
  }
  func.func @transform_3(%arg0: i32, %arg1: i32) -> (i32, i32) {
    %c0_i32 = arith.constant 0 : i32
    %c0_i32_0 = arith.constant 0 : i32
    return %arg0, %c0_i32 : i32, i32
  }
  func.func @transform_4(%arg0: i32, %arg1: i32) -> (i32, i32) {
    %c0_i32 = arith.constant 0 : i32
    return %arg0, %arg1 : i32, i32
  }
}

</mosaic_0001>

<bundles_post_ra>
// kernel: tpu_custom_call.1
= control target key start
LH: loop header
LB: loop body
LE: loop exit
PB: predicated region body
PF: predicated region fallthrough
CT: control target
= control target key end

     0   :  { %10 = vsyncpa [#allocation4], 0  ;;  %s2435_s0 = inlined_call_operand.hbm [shape: bf16[32,1024], index: 0, kind: input, shape index: {}]   ;;  %s2436_s1 = inlined_call_operand.hbm [shape: bf16[1024,128], index: 1, kind: input, shape index: {}]   ;;  %s2437_s2 = inlined_call_operand.hbm [shape: bf16[128,512], index: 2, kind: input, shape index: {}]   ;;  %s2438_s3 = inlined_call_operand.hbm [shape: f32[32,128], index: 3, kind: output, shape index: {0}]   ;;  %s2439_s4 = inlined_call_operand.hbm [shape: f32[32,512], index: 4, kind: output, shape index: {1}]  }
   0x1   :  { %12 = vsyncpa [#allocation4 + $0x1], 0 }
   0x2   :  { %13 = vsyncpa [#allocation7], 0 }
   0x3   :  { %14 = vsyncpa [#allocation5], 0 }
   0x4   :  { %16 = vsyncpa [#allocation5 + $0x1], 0 }
   0x5   :  { %17 = vsyncpa [#allocation11], 0 }
   0x6   :  { %19 = vsyncpa [#allocation11 + $0x1], 0  ;;  %s2191_s15 = smov 0   ;;  %s2193_s16 = smov 0  }
   0x7   :  { %s2195_s17 = smov 0   ;;  %s2197_s18 = smov 0  }
   0x8   :  { %s2199_s19 = smov 0   ;;  %s2201_s20 = smov 0  }
   0x9 LB: > { %s1506_s21 = sadd.s32 4294967295, %s2148_s20   ;;  %s1507_s22 = sadd.s32 4294967294, %s2148_s20   ;;  %s2148_s20 = sphi %s2201_s20, %s25_s20   ;;  %s2144_s19 = sphi %s2199_s19, %s2459_s19   ;;  %s2140_s18 = sphi %s2197_s18, %s2458_s18   ;;  %s2136_s17 = sphi %s2195_s17, %s2457_s17   ;;  %s2132_s16 = sphi %s2193_s16, %s2456_s16   ;;  %s2128_s15 = sphi %s2191_s15, %s2455_s15  }
   0xa   : > { %p57_p0 = scmp.ne.s32.totalorder %s2132_s16, %s2128_s15  ;;  %p2225_p1 = scmp.eq.s32.totalorder %s1506_s21, 0 }
   0xb   : > { %p2229_p2 = scmp.eq.s32.totalorder %s1506_s21, 1  ;;  %p134_p3 = scmp.eq.s32.totalorder %s1507_s22, 1 }
   0xc   : > { %s2443_s23 = scalar_select %p2225_p1, 1, 0 }
   0xd   : > { %p2235_p4 = por %p2225_p1, %p57_p0  ;;  %p1508_p5 = scmp.ge.s32.totalorder %s2148_s20, 1 }
   0xe   : > { %p2240_p6 = por %p134_p3, %p57_p0  ;;  %p169_p7 = scmp.lt.s32.totalorder %s2148_s20, 3 }
   0xf   : > { %s2445_s25 = scalar_select %p2235_p4, 1, 0 }
  0x10   : > { %s2446_s26 = scalar_select %p2240_p6, 1, 0 }
  0x11   : > { %p2245_p8 = pnand %p1508_p5, %p169_p7  ;;  %s2150_s28 = smov [#allocation6]  }
  0x12   : > { %s181_s29 = sshll.u32 %s2150_s28, 4  ;;  %s2151_s5 = smov [#allocation8]   ;;  %s182_s29 = int_to_ptr.vmem [resolvable:$true] %s181_s29 }
  0x13   : > { %p1752_p9 = pneg %p2245_p8  ;;  %s197_s6 = sshll.u32 %s2151_s5, 4  ;;  %s198_s6 = int_to_ptr.vmem [resolvable:$true] %s197_s6 }
  0x14   : > { %s1965_s7 = scalar_lea.vmem %s182_s29, 8192  ;;  %p1973_p5 = scmp.lt.s32.totalorder %s182_s29, %s182_s29 }
  0x15   : > { %p2254_p11 = pnand %p1752_p9, %p2225_p1  ;;  %p1966_p13 = scmp.ne.s32.totalorder %s182_s29, %s1965_s7 }
  0x16   : > { %p1974_p7 = scmp.lt.s32.totalorder %s1965_s7, %s1965_s7 }
  0x17   : > { %p1956_p12 = pneg %p2254_p11 }
  0x18   : > { %p1975_p10 = por %p1974_p7, %p1973_p5 }
  0x19   : > { %p1968_p0 = pnand %p1966_p13, %p1956_p12 }
  0x1b   : > { %p1969_p3 = pneg %p1968_p0 }
  0x1d   : > { %p1976_p9 = pnand %p1975_p10, %p1969_p3 }
  0x1f   : > { %1979 = shalt.err (!%p1976_p9)
}
  0x20   : > { %s2152_s8 = smov 64   ;;  %s2153_s9 = smov 4  }
  0x21   : > { %1755 = dma.hbm_to_vmem [thread:$0]  (!%p2254_p11), %s2436_s1, 8192, %s182_s29, [#allocation7], %s2152_s8, %s2152_s8, %s2153_s9  }
  0x22   : > { %s1991_s12 = scalar_lea.vmem %s198_s6, 4096  ;;  %p1999_p1 = scmp.lt.s32.totalorder %s198_s6, %s198_s6 }
  0x23   : > { %p1992_p6 = scmp.ne.s32.totalorder %s198_s6, %s1991_s12  ;;  %p2000_p4 = scmp.lt.s32.totalorder %s1991_s12, %s1991_s12 }
  0x25   : > { %p1994_p13 = pnand %p1992_p6, %p1956_p12  ;;  %p2001_p5 = por %p2000_p4, %p1999_p1 }
  0x27   : > { %p1995_p0 = pneg %p1994_p13 }
  0x29   : > { %p2002_p10 = pnand %p2001_p5, %p1995_p0 }
  0x2b   : > { %2005 = shalt.err (!%p2002_p10)
}
  0x2c   : > { %s2154_s13 = smov 256   ;;  %s2155_s14 = smov 16  }
  0x2d   : > { %1758 = dma.hbm_to_vmem [thread:$0]  (!%p2254_p11), %s2437_s2, 4096, %s198_s6, [#allocation7], %s2154_s13, %s2154_s13, %s2155_s14  }
  0x2e   : > { %s37_s28 = sadd.s32 1, %s2144_s19  ;;  %s44_s29 = sadd.s32 1, %s2136_s17 }
  0x2f   : > { %p39_p1 = scmp.ge.s32.totalorder %s37_s28, 2  ;;  %p51_p4 = scmp.ne.s32.totalorder %s2136_s17, %s2132_s16 }
  0x30   : > { %p52_p6 = scmp.eq.s32.totalorder %s2148_s20, 0  ;;  %p1772_p12 = scmp.lt.s32.totalorder %s2148_s20, 2 }
  0x31   : > { %s2461_s28 = smov (%p39_p1, %s37_s28), 0  ;;  %p2286_p7 = por %p2229_p2, %p51_p4 }
  0x32   : > { %p53_p3 = por %p52_p6, %p51_p4  ;;  %s41_s30 = ssub.s32 %s2144_s19, %s2461_s28 }
  0x33   : > { %s211_s7 = sand.u32 1, %s2136_s17   ;;  %p42_p9 = scmp.eq.s32.totalorder %s41_s30, 0 }
  0x34   : > { %s1512_s6 = sshll.u32 %s211_s7, 6  ;;  %s1639_s8 = sshll.u32 %s2144_s19, 10 }
  0x35   : > { %s2295_s9 = scalar_select %p42_p9, %s2136_s17, %s44_s29  }
  0x36   : > { %s222_s12 = scalar_lea.hbm %s2435_s0, %s1639_s8  ;;  %s215_s13 = scalar_lea.vmem [#allocation3], %s1512_s6 }
  0x37   : > { %s223_s14 = sshll.u32 %s215_s13, 4  ;;  %p2302_p11 = pnand %p1772_p12, %p53_p3  ;;  %s224_s14 = int_to_ptr.vmem [resolvable:$true] %s223_s14 }
  0x38   : > { %s212_s21 = scalar_lea.sflag [#allocation4], %s211_s7  ;;  %s2019_s22 = scalar_lea.vmem %s224_s14, 1024 }
  0x39   : > { %p2008_p2 = pneg %p2302_p11  ;;  %p2020_p13 = scmp.ne.s32.totalorder %s224_s14, %s2019_s22 }
  0x3a   : > { %s2156_s29 = smov [#allocation3]  }
  0x3b   : > { %p2022_p0 = pnand %p2020_p13, %p2008_p2  ;;  %s2024_s30 = sshll.u32 %s2156_s29, 4  ;;  %s2025_s30 = int_to_ptr.vmem [resolvable:$false] %s2024_s30 }
  0x3c   : > { %s2026_s8 = scalar_lea.vmem %s2025_s30, 2048  ;;  %p2027_p10 = scmp.lt.s32.totalorder %s224_s14, %s2025_s30 }
  0x3d   : > { %p2023_p5 = pneg %p2022_p0  ;;  %p2028_p1 = scmp.lt.s32.totalorder %s2026_s8, %s2019_s22 }
  0x3f   : > { %p2029_p4 = por %p2028_p1, %p2027_p10 }
  0x41   : > { %p2030_p6 = pnand %p2029_p4, %p2023_p5 }
  0x43   : > { %2033 = shalt.err (!%p2030_p6)
}
  0x44   : > { %s2157_s6 = smov 512   ;;  %s2158_s10 = smov 32  }
  0x45   : > { %1762 = dma.hbm_to_vmem [thread:$0]  (!%p2302_p11), %s222_s12, 1024, %s224_s14, %s212_s21, %s2157_s6, %s2157_s6, %s2158_s10  }
  0x46   : > { %235 = sbr.rel (%p2245_p8) target bundleno = 731 (0x2db), region = 32  ;;  %s2313_s7 = sand.u32 (!%p2245_p8), 1, %s2132_s16  }
  0x47   : > { %s1517_s11 = sshll.u32 (!%p2245_p8), %s2313_s7, 6  ;;  %s238_s13 = scalar_lea.sflag (!%p2245_p8), [#allocation4], %s2313_s7 }
  0x48   : > { %s2319_s22 = scalar_lea.vmem (!%p2245_p8), [#allocation3], %s1517_s11  ;;  %p2451_p12 = scmp.ne.s32.totalorder (!%p2245_p8), %s2445_s25, 0 }
  0x4b   : > { %2111 = dma.done.wait (%p2451_p12), %s238_s13, 1024  }
  0x4c   : > { %2113 = vsyncadd (%p2451_p12), %s238_s13, 4294966272  ;;  %p2452_p3 = scmp.ne.s32.totalorder %s2443_s23, 0 }
  0x4e   : > { %2115 = dma.done.wait (%p2452_p3), [#allocation7], 12288  }
  0x4f   : > { %2117 = vsyncadd (%p2452_p3), [#allocation7], 4294955008  ;;  %v1837_v0 = vld [vmem:[#allocation6 + $0x78] sm:$0xff]   ;;  %v1841_v4 = vld [vmem:[#allocation6 + $0x70] sm:$0xff]   ;;  %s1520_s23 = sshll.u32 %s2313_s7, 4  ;;  %s1642_s27 = sshll.u32 %s2140_s18, 8 }
  0x50   : > { %v1838_v1 = vld [vmem:[#allocation6 + $0xf8] sm:$0xff]   ;;  %1650 = vmatprep.subr.bf16.mxu0 %v1837_v0  ;;  %v1842_v5 = vld [vmem:[#allocation6 + $0xf0] sm:$0xff]   ;;  %v1845_v8 = vld [vmem:[#allocation6 + $0x68] sm:$0xff]   ;;  %s271_s25 = scalar_lea.vmem [#allocation9], %s1520_s23  ;;  %s2352_s24 = scalar_lea.hbm %s2438_s3, %s1642_s27 }
  0x51   : > { %v1839_v2 = vld [vmem:[#allocation6 + $0x38] sm:$0xff]   ;;  %1672 = vmatprep.subr.bf16.mxu1 %v1838_v1  ;;  %v1843_v6 = vld [vmem:[#allocation6 + $0x30] sm:$0xff]   ;;  %v1846_v9 = vld [vmem:[#allocation6 + $0xe8] sm:$0xff]   ;;  %s1350_s21 = sshll.u32 %s271_s25, 4  ;;  %s1332_s29 = scalar_lea.sflag [#allocation5], %s2313_s7  ;;  %s2354_s21 = int_to_ptr.vmem [resolvable:$true] %s1350_s21 }
  0x52   : > { %v1840_v3 = vld [vmem:[#allocation6 + $0xb8] sm:$0xff]   ;;  %1651 = vmatpush3.bf16.msra.mxu0 %v1839_v2  ;;  %v1844_v7 = vld [vmem:[#allocation6 + $0xb0] sm:$0xff]   ;;  %v1847_v10 = vld [vmem:[#allocation6 + $0x28] sm:$0xff]   ;;  %s2034_s30 = scalar_lea.vmem %s2354_s21, 256  ;;  %s2160_s8 = smov [#allocation9]  }
  0x53   : > { %1673 = vmatpush3.bf16.msra.mxu1 %v1840_v3  ;;  %1652 = vmatprep.subr.bf16.mxu0 %v1841_v4  ;;  %v1848_v11 = vld [vmem:[#allocation6 + $0xa8] sm:$0xff]   ;;  %v1849_v12 = vld [vmem:[#allocation6 + $0x60] sm:$0xff]   ;;  %v1853_v16 = vld [vmem:[#allocation6 + $0x58] sm:$0xff]   ;;  %p2035_p8 = scmp.ne.s32.totalorder %s2354_s21, %s2034_s30  ;;  %s2038_s6 = sshll.u32 %s2160_s8, 4  ;;  %s2039_s6 = int_to_ptr.vmem [resolvable:$false] %s2038_s6 }
  0x54   : > { %1674 = vmatprep.subr.bf16.mxu1 %v1842_v5  ;;  %v1850_v13 = vld [vmem:[#allocation6 + $0xe0] sm:$0xff]   ;;  %v1854_v17 = vld [vmem:[#allocation6 + $0xd8] sm:$0xff]   ;;  %v1857_v20 = vld [vmem:[#allocation6 + $0x50] sm:$0xff]   ;;  %s2040_s10 = scalar_lea.vmem %s2039_s6, 512  ;;  %p2041_p2 = scmp.lt.s32.totalorder %s2354_s21, %s2039_s6 }
  0x55   : > { %v1851_v14 = vld [vmem:[#allocation6 + $0x20] sm:$0xff]   ;;  %v1855_v18 = vld [vmem:[#allocation6 + $0x18] sm:$0xff]   ;;  %v1858_v21 = vld [vmem:[#allocation6 + $0xd0] sm:$0xff]   ;;  %p2036_p9 = pnand %p2035_p8, %p2286_p7  ;;  %p2042_p13 = scmp.lt.s32.totalorder %s2040_s10, %s2034_s30 }
  0x56   : > { %1653 = vmatpush3.bf16.msra.mxu0 %v1843_v6  ;;  %v1852_v15 = vld [vmem:[#allocation6 + $0xa0] sm:$0xff]   ;;  %v1856_v19 = vld [vmem:[#allocation6 + $0x98] sm:$0xff]   ;;  %v1859_v22 = vld [vmem:[#allocation6 + $0x10] sm:$0xff]  }
  0x57   : > { %1675 = vmatpush3.bf16.msra.mxu1 %v1844_v7  ;;  %1654 = vmatprep.subr.bf16.mxu0 %v1845_v8  ;;  %v1860_v23 = vld [vmem:[#allocation6 + $0x90] sm:$0xff]   ;;  %v1861_v24 = vld [vmem:[#allocation6 + $0x48] sm:$0xff]   ;;  %v1865_v28 = vld [vmem:[#allocation6 + $0x40] sm:$0xff]   ;;  %p2037_p11 = pneg %p2036_p9  ;;  %p2043_p0 = por %p2042_p13, %p2041_p2 }
  0x58   : > { %1676 = vmatprep.subr.bf16.mxu1 %v1846_v9  ;;  %v1862_v25 = vld [vmem:[#allocation6 + $0xc8] sm:$0xff]   ;;  %v1866_v29 = vld [vmem:[#allocation6 + $0xc0] sm:$0xff]   ;;  %v1869_v40 = vld [vmem:[#allocation6 + $0x178] sm:$0xff]  }
  0x59   : > { %v1863_v26 = vld [vmem:[#allocation6 + $0x8] sm:$0xff]   ;;  %v1867_v30 = vld [vmem:[#allocation6] sm:$0xff]   ;;  %v1870_v41 = vld [vmem:[#allocation6 + $0x1f8] sm:$0xff]   ;;  %p2044_p5 = pnand %p2043_p0, %p2037_p11 }
  0x5a   : > { %1655 = vmatpush3.bf16.msra.mxu0 %v1847_v10  ;;  %v1864_v27 = vld [vmem:[#allocation6 + $0x88] sm:$0xff]   ;;  %v1868_v31 = vld [vmem:[#allocation6 + $0x80] sm:$0xff]   ;;  %v1871_v42 = vld [vmem:[#allocation6 + $0x138] sm:$0xff]  }
  0x5b   : > { %1677 = vmatpush3.bf16.msra.mxu1 %v1848_v11  ;;  %1656 = vmatprep.subr.bf16.mxu0 %v1849_v12  ;;  %v289_v32 = vld [vmem:[%s2319_s22] sm:$0xff]  ;;  %v290_v34 = vld [vmem:[%s2319_s22 + $0x8] sm:$0xff]  ;;  %v1872_v43 = vld [vmem:[#allocation6 + $0x1b8] sm:$0xff]  }
  0x5c   : > { %1678 = vmatprep.subr.bf16.mxu1 %v1850_v13  ;;  %v293_v33 = vld [vmem:[%s2319_s22 + $0x20] sm:$0xff]  ;;  %v294_v37 = vld [vmem:[%s2319_s22 + $0x28] sm:$0xff]  ;;  %v1873_v44 = vld [vmem:[#allocation6 + $0x170] sm:$0xff]  }
  0x5d   : > { %v1522_v35 = vcombine.low %v289_v32, %v293_v33  ;;  %v1523_v36 = vcombine.high %v289_v32, %v293_v33  ;;  %v1524_v38 = vcombine.low %v290_v34, %v294_v37  ;;  %v1525_v39 = vcombine.high %v290_v34, %v294_v37  ;;  %v1874_v45 = vld [vmem:[#allocation6 + $0x1f0] sm:$0xff]   ;;  %v1877_v48 = vld [vmem:[#allocation6 + $0x168] sm:$0xff]   ;;  %v1881_v52 = vld [vmem:[#allocation6 + $0x160] sm:$0xff]  }
  0x5e   : > { %1657 = vmatpush3.bf16.msra.mxu0 %v1851_v14  ;;  %v1875_v46 = vld [vmem:[#allocation6 + $0x130] sm:$0xff]   ;;  %v1878_v49 = vld [vmem:[#allocation6 + $0x1e8] sm:$0xff]   ;;  %v1882_v53 = vld [vmem:[#allocation6 + $0x1e0] sm:$0xff]  }
  0x5f   : > { %1679 = vmatpush3.bf16.msra.mxu1 %v1852_v15  ;;  %1658 = vmatprep.subr.bf16.mxu0 %v1853_v16  ;;  %v1876_v47 = vld [vmem:[#allocation6 + $0x1b0] sm:$0xff]   ;;  %v1879_v50 = vld [vmem:[#allocation6 + $0x128] sm:$0xff]   ;;  %v1883_v54 = vld [vmem:[#allocation6 + $0x120] sm:$0xff]  }
  0x60   : > { %1680 = vmatprep.subr.bf16.mxu1 %v1854_v17  ;;  %881 = vmatprep.mubr.bf16.mxu0 %v1523_v36  ;;  %v1880_v51 = vld [vmem:[#allocation6 + $0x1a8] sm:$0xff]   ;;  %v1884_v55 = vld [vmem:[#allocation6 + $0x1a0] sm:$0xff]   ;;  %v1885_v56 = vld [vmem:[#allocation6 + $0x158] sm:$0xff]  }
  0x61   : > { %922 = vmatprep.mubr.bf16.mxu1 %v1525_v39  ;;  %v1886_v57 = vld [vmem:[#allocation6 + $0x1d8] sm:$0xff]   ;;  %v1889_v60 = vld [vmem:[#allocation6 + $0x150] sm:$0xff]   ;;  %v1893_v0 = vld [vmem:[#allocation6 + $0x148] sm:$0xff]  }
  0x62   : > { %1659 = vmatpush3.bf16.msra.mxu0 %v1855_v18  ;;  %v1887_v58 = vld [vmem:[#allocation6 + $0x118] sm:$0xff]   ;;  %v1890_v61 = vld [vmem:[#allocation6 + $0x1d0] sm:$0xff]   ;;  %v1894_v1 = vld [vmem:[#allocation6 + $0x1c8] sm:$0xff]  }
  0x63   : > { %1681 = vmatpush3.bf16.msra.mxu1 %v1856_v19  ;;  %1660 = vmatprep.subr.bf16.mxu0 %v1857_v20  ;;  %v1888_v59 = vld [vmem:[#allocation6 + $0x198] sm:$0xff]   ;;  %v1891_v62 = vld [vmem:[#allocation6 + $0x110] sm:$0xff]   ;;  %v1895_v2 = vld [vmem:[#allocation6 + $0x108] sm:$0xff]  }
  0x64   : > { %1682 = vmatprep.subr.bf16.mxu1 %v1858_v21  ;;  %v1892_v63 = vld [vmem:[#allocation6 + $0x190] sm:$0xff]   ;;  %v1896_v3 = vld [vmem:[#allocation6 + $0x188] sm:$0xff]   ;;  %v1897_v4 = vld [vmem:[#allocation6 + $0x140] sm:$0xff]  }
  0x65   : > { %v1898_v5 = vld [vmem:[#allocation6 + $0x1c0] sm:$0xff]   ;;  %v291_v8 = vld [vmem:[%s2319_s22 + $0x10] sm:$0xff]  ;;  %v292_v12 = vld [vmem:[%s2319_s22 + $0x18] sm:$0xff] }
  0x66   : > { %1661 = vmatpush3.bf16.msra.mxu0 %v1859_v22  ;;  %v1899_v6 = vld [vmem:[#allocation6 + $0x100] sm:$0xff]   ;;  %v295_v9 = vld [vmem:[%s2319_s22 + $0x30] sm:$0xff]  ;;  %v296_v13 = vld [vmem:[%s2319_s22 + $0x38] sm:$0xff] }
  0x67   : > { %1683 = vmatpush3.bf16.msra.mxu1 %v1860_v23  ;;  %1662 = vmatprep.subr.bf16.mxu0 %v1861_v24  ;;  %v1900_v7 = vld [vmem:[#allocation6 + $0x180] sm:$0xff]   ;;  %v1526_v10 = vcombine.low %v291_v8, %v295_v9  ;;  %v1527_v11 = vcombine.high %v291_v8, %v295_v9  ;;  %v1528_v14 = vcombine.low %v292_v12, %v296_v13 }
  0x68   : > { %1684 = vmatprep.subr.bf16.mxu1 %v1862_v25  ;;  %v1529_v15 = vcombine.high %v292_v12, %v296_v13  ;;  %v1937_v8 = vld [vmem:[#allocation8 + $0x20] ss:$16 sps:$4 sm:$0xff]   ;;  %v1939_v9 = vld [vmem:[#allocation8 + $0x24] ss:$16 sps:$4 sm:$0xff]   ;;  %v1948_v13 = vld [vmem:[#allocation8 + $0xc] ss:$16 sps:$4 sm:$0xff]  }
  0x69   : > { %v1945_v12 = vld [vmem:[#allocation8 + $0x4] ss:$16 sps:$4 sm:$0xff]  }
  0x6a   : > { %1663 = vmatpush3.bf16.msra.mxu0 %v1863_v26 }
  0x6b   : > { %1685 = vmatpush3.bf16.msra.mxu1 %v1864_v27  ;;  %1664 = vmatprep.subr.bf16.mxu0 %v1865_v28 }
  0x6c   : > { %1686 = vmatprep.subr.bf16.mxu1 %v1866_v29 }
  0x6e   : > { %1665 = vmatpush3.bf16.msra.mxu0 %v1867_v30 }
  0x6f   : > { %1687 = vmatpush3.bf16.msra.mxu1 %v1868_v31  ;;  %1694 = vmatprep.subr.bf16.mxu0 %v1869_v40 }
  0x70   : > { %1716 = vmatprep.subr.bf16.mxu1 %v1870_v41 }
  0x71   : > { %882 = vmatmul.mubr.bf16.vlgmr.msra.gmra.mxu0 %v1522_v35 }
  0x72   : > { %923 = vmatmul.mubr.bf16.vlgmr.msra.gmra.mxu1 %v1524_v38  ;;  %1695 = vmatpush3.bf16.msra.mxu0 %v1871_v42 }
  0x73   : > { %1717 = vmatpush3.bf16.msra.mxu1 %v1872_v43  ;;  %1696 = vmatprep.subr.bf16.mxu0 %v1873_v44 }
  0x74   : > { %1718 = vmatprep.subr.bf16.mxu1 %v1874_v45  ;;  %963 = vmatprep.mubr.bf16.mxu0 %v1527_v11  ;;  %v1942_v11 = vld [vmem:[#allocation8 + $0x2c] ss:$16 sps:$4 sm:$0xff]  }
  0x75   : > { %1004 = vmatprep.mubr.bf16.mxu1 %v1529_v15  ;;  %v1946_v15 = vld [vmem:[#allocation8 + $0x8] ss:$16 sps:$4 sm:$0xff]  }
  0x76   : > { %1697 = vmatpush3.bf16.msra.mxu0 %v1875_v46 }
  0x77   : > { %1719 = vmatpush3.bf16.msra.mxu1 %v1876_v47  ;;  %1698 = vmatprep.subr.bf16.mxu0 %v1877_v48  ;;  %v1903_v48 = vld [vmem:[#allocation8 + $0xe4] ss:$16 sps:$4 sm:$0xff]  }
  0x78   : > { %1720 = vmatprep.subr.bf16.mxu1 %v1878_v49  ;;  %v1906_v49 = vld [vmem:[#allocation8 + $0xec] ss:$16 sps:$4 sm:$0xff]  }
  0x7a   : > { %1699 = vmatpush3.bf16.msra.mxu0 %v1879_v50  ;;  %v1901_v50 = vld [vmem:[#allocation8 + $0xe0] ss:$16 sps:$4 sm:$0xff]  }
  0x7b   : > { %1721 = vmatpush3.bf16.msra.mxu1 %v1880_v51  ;;  %1700 = vmatprep.subr.bf16.mxu0 %v1881_v52  ;;  %v1904_v51 = vld [vmem:[#allocation8 + $0xe8] ss:$16 sps:$4 sm:$0xff]   ;;  %v1909_v52 = vld [vmem:[#allocation8 + $0xc4] ss:$16 sps:$4 sm:$0xff]  }
  0x7c   : > { %1722 = vmatprep.subr.bf16.mxu1 %v1882_v53  ;;  %v1912_v53 = vld [vmem:[#allocation8 + $0xcc] ss:$16 sps:$4 sm:$0xff]  }
  0x7e   : > { %1701 = vmatpush3.bf16.msra.mxu0 %v1883_v54  ;;  %v1907_v54 = vld [vmem:[#allocation8 + $0xc0] ss:$16 sps:$4 sm:$0xff]  }
  0x7f   : > { %1723 = vmatpush3.bf16.msra.mxu1 %v1884_v55  ;;  %1702 = vmatprep.subr.bf16.mxu0 %v1885_v56  ;;  %v1910_v55 = vld [vmem:[#allocation8 + $0xc8] ss:$16 sps:$4 sm:$0xff]   ;;  %v1915_v56 = vld [vmem:[#allocation8 + $0xa4] ss:$16 sps:$4 sm:$0xff]  }
  0x80   : > { %1724 = vmatprep.subr.bf16.mxu1 %v1886_v57  ;;  %v1918_v57 = vld [vmem:[#allocation8 + $0xac] ss:$16 sps:$4 sm:$0xff]  }
  0x82   : > { %1703 = vmatpush3.bf16.msra.mxu0 %v1887_v58  ;;  %v1913_v58 = vld [vmem:[#allocation8 + $0xa0] ss:$16 sps:$4 sm:$0xff]  }
  0x83   : > { %1725 = vmatpush3.bf16.msra.mxu1 %v1888_v59  ;;  %1704 = vmatprep.subr.bf16.mxu0 %v1889_v60  ;;  %v1916_v59 = vld [vmem:[#allocation8 + $0xa8] ss:$16 sps:$4 sm:$0xff]   ;;  %v1921_v60 = vld [vmem:[#allocation8 + $0x84] ss:$16 sps:$4 sm:$0xff]  }
  0x84   : > { %1726 = vmatprep.subr.bf16.mxu1 %v1890_v61  ;;  %v1924_v61 = vld [vmem:[#allocation8 + $0x8c] ss:$16 sps:$4 sm:$0xff]  }
  0x86   : > { %1705 = vmatpush3.bf16.msra.mxu0 %v1891_v62  ;;  %v1919_v62 = vld [vmem:[#allocation8 + $0x80] ss:$16 sps:$4 sm:$0xff]  }
  0x87   : > { %1727 = vmatpush3.bf16.msra.mxu1 %v1892_v63  ;;  %1706 = vmatprep.subr.bf16.mxu0 %v1893_v0  ;;  %v1922_v63 = vld [vmem:[#allocation8 + $0x88] ss:$16 sps:$4 sm:$0xff]   ;;  %v1927_v0 = vld [vmem:[#allocation8 + $0x64] ss:$16 sps:$4 sm:$0xff]  }
  0x88   : > { %1728 = vmatprep.subr.bf16.mxu1 %v1894_v1  ;;  %v1930_v1 = vld [vmem:[#allocation8 + $0x6c] ss:$16 sps:$4 sm:$0xff]  }
  0x8a   : > { %1707 = vmatpush3.bf16.msra.mxu0 %v1895_v2  ;;  %v1925_v2 = vld [vmem:[#allocation8 + $0x60] ss:$16 sps:$4 sm:$0xff]  }
  0x8b   : > { %1729 = vmatpush3.bf16.msra.mxu1 %v1896_v3  ;;  %1708 = vmatprep.subr.bf16.mxu0 %v1897_v4  ;;  %v1928_v3 = vld [vmem:[#allocation8 + $0x68] ss:$16 sps:$4 sm:$0xff]   ;;  %v1933_v4 = vld [vmem:[#allocation8 + $0x44] ss:$16 sps:$4 sm:$0xff]  }
  0x8c   : > { %1730 = vmatprep.subr.bf16.mxu1 %v1898_v5  ;;  %v1936_v5 = vld [vmem:[#allocation8 + $0x4c] ss:$16 sps:$4 sm:$0xff]  }
  0x8e   : > { %1709 = vmatpush3.bf16.msra.mxu0 %v1899_v6  ;;  %v1931_v6 = vld [vmem:[#allocation8 + $0x40] ss:$16 sps:$4 sm:$0xff]  }
  0x8f   : > { %1731 = vmatpush3.bf16.msra.mxu1 %v1900_v7  ;;  %1237 = vmatprep.subr.bf16.mxu0 %v1903_v48  ;;  %v1934_v7 = vld [vmem:[#allocation8 + $0x48] ss:$16 sps:$4 sm:$0xff]  }
  0x90   : > { %1280 = vmatprep.subr.bf16.mxu1 %v1906_v49 }
  0x91   : > { %964 = vmatmul.mubr.bf16.vlgmr.msra.gmra.mxu0 %v1526_v10  ;;  %v1940_v10 = vld [vmem:[#allocation8 + $0x28] ss:$16 sps:$4 sm:$0xff]  }
  0x92   : > { %1005 = vmatmul.mubr.bf16.vlgmr.msra.gmra.mxu1 %v1528_v14  ;;  %1238 = vmatpush1.bf16.msra.mxu0 %v1901_v50  ;;  %v1943_v14 = vld [vmem:[#allocation8] ss:$16 sps:$4 sm:$0xff]  }
  0x93   : > { %1281 = vmatpush1.bf16.msra.mxu1 %v1904_v51  ;;  %1239 = vmatprep.subr.bf16.mxu0 %v1909_v52 }
  0x94   : > { %1282 = vmatprep.subr.bf16.mxu1 %v1912_v53 }
  0x96   : > { %1240 = vmatpush1.bf16.msra.mxu0 %v1907_v54 }
  0x97   : > { %1283 = vmatpush1.bf16.msra.mxu1 %v1910_v55  ;;  %1241 = vmatprep.subr.bf16.mxu0 %v1915_v56 }
  0x98   : > { %1284 = vmatprep.subr.bf16.mxu1 %v1918_v57 }
  0x9a   : > { %1242 = vmatpush1.bf16.msra.mxu0 %v1913_v58 }
  0x9b   : > { %1285 = vmatpush1.bf16.msra.mxu1 %v1916_v59  ;;  %1243 = vmatprep.subr.bf16.mxu0 %v1921_v60 }
  0x9c   : > { %1286 = vmatprep.subr.bf16.mxu1 %v1924_v61 }
  0x9e   : > { %1244 = vmatpush1.bf16.msra.mxu0 %v1919_v62 }
  0x9f   : > { %1287 = vmatpush1.bf16.msra.mxu1 %v1922_v63  ;;  %1245 = vmatprep.subr.bf16.mxu0 %v1927_v0 }
  0xa0   : > { %1288 = vmatprep.subr.bf16.mxu1 %v1930_v1 }
  0xa2   : > { %1246 = vmatpush1.bf16.msra.mxu0 %v1925_v2 }
  0xa3   : > { %1289 = vmatpush1.bf16.msra.mxu1 %v1928_v3  ;;  %1247 = vmatprep.subr.bf16.mxu0 %v1933_v4 }
  0xa4   : > { %1290 = vmatprep.subr.bf16.mxu1 %v1936_v5 }
  0xa6   : > { %1248 = vmatpush1.bf16.msra.mxu0 %v1931_v6 }
  0xa7   : > { %1291 = vmatpush1.bf16.msra.mxu1 %v1934_v7  ;;  %1249 = vmatprep.subr.bf16.mxu0 %v1939_v9 }
  0xa8   : > { %1292 = vmatprep.subr.bf16.mxu1 %v1942_v11 }
  0xaa   : > { %1250 = vmatpush1.bf16.msra.mxu0 %v1937_v8 }
  0xab   : > { %1293 = vmatpush1.bf16.msra.mxu1 %v1940_v10  ;;  %1251 = vmatprep.subr.bf16.mxu0 %v1945_v12 }
  0xac   : > { %1294 = vmatprep.subr.bf16.mxu1 %v1948_v13 }
  0xae   : > { %1252 = vmatpush1.bf16.msra.mxu0 %v1943_v14 }
  0xaf   : > { %1295 = vmatpush1.bf16.msra.mxu1 %v1946_v15 }
 0x131   : > { %v1666_v16 = vpop.f32.mrf.mxu0 }
 0x132   : > { %v1688_v17 = vpop.f32.mrf.mxu1 }
 0x133   : > { %v1667_v18 = vpop.f32.mrf.mxu0 }
 0x134   : > { %v1689_v19 = vpop.f32.mrf.mxu1  ;;  %v1668_v23 = vadd.f32 %v1667_v18, %v1666_v16  ;;  %v2159_v16 = vmov 0  }
 0x135   : > { %v1669_v20 = vpop.f32.mrf.mxu0  ;;  %v1690_v24 = vadd.f32 %v1689_v19, %v1688_v17  ;;  %1269 = vmatprep.mubr.bf16.mxu0 %v2159_v16  ;;  %1312 = vmatprep.mubr.bf16.mxu1 %v2159_v16 }
 0x136   : > { %v1691_v21 = vpop.f32.mrf.mxu1 }
 0x137   : > { %v1670_v22 = vpop.f32.mrf.mxu0  ;;  %v925_v29 = vadd.f32 %v1690_v24, %v1668_v23 }
 0x138   : > { %v1692_v25 = vpop.f32.mrf.mxu1  ;;  %v1671_v30 = vadd.f32 %v1670_v22, %v1669_v20 }
 0x139   : > { %v1693_v31 = vadd.f32 %v1692_v25, %v1691_v21 }
 0x13b   : > { %v928_v39 = vadd.f32 %v1693_v31, %v1671_v30 }
 0x151   : > { %v1710_v26 = vpop.f32.mrf.mxu0 }
 0x152   : > { %v1732_v27 = vpop.f32.mrf.mxu1 }
 0x153   : > { %v1711_v28 = vpop.f32.mrf.mxu0 }
 0x154   : > { %v1712_v32 = vadd.f32 %v1711_v28, %v1710_v26  ;;  %v1733_v33 = vpop.f32.mrf.mxu1 }
 0x155   : > { %v1713_v34 = vpop.f32.mrf.mxu0  ;;  %v1734_v36 = vadd.f32 %v1733_v33, %v1732_v27 }
 0x156   : > { %v966_v35 = vadd.f32 %v1712_v32, %v925_v29  ;;  %v1735_v37 = vpop.f32.mrf.mxu1 }
 0x157   : > { %v1714_v38 = vpop.f32.mrf.mxu0 }
 0x158   : > { %v1715_v40 = vadd.f32 %v1714_v38, %v1713_v34  ;;  %v1736_v41 = vpop.f32.mrf.mxu1  ;;  %v2337_v42 = vadd.f32 %v1734_v36, %v966_v35 }
 0x159   : > { %v1737_v44 = vadd.f32 %v1736_v41, %v1735_v37 }
 0x15a   : > { %v969_v43 = vadd.f32 %v1715_v40, %v928_v39  ;;  %v1013_v45 = vmul.f32 %v2337_v42, %v2337_v42 }
 0x15c   : > { %v2341_v46 = vadd.f32 %v1737_v44, %v969_v43  ;;  %1015 = vadd.xlane.f32.xlu0 %v1013_v45 }
 0x15e   : > { %v1014_v47 = vmul.f32 %v2341_v46, %v2341_v46 }
 0x160   : > { %1017 = vadd.xlane.f32.xlu0 %v1014_v47 }
 0x1e5   : > { %v1016_v17 = vpop.xlane.xlu0 %1015 }
 0x1e6   : > { %v1019_v18 = vmax.f32 %v1016_v17, 1e-24 }
 0x1e8   : > { %1950 = vrsqrt.f32 %v1019_v18 }
 0x1e9   : > { %v1018_v19 = vpop.xlane.xlu0 %1017 }
 0x1ea   : > { %v1020_v20 = vmax.f32 %v1018_v19, 1e-24 }
 0x1ec   : > { %1952 = vrsqrt.f32 %v1020_v20 }
 0x1f5   : > { %v1951_v21 = vpop.eup %1950 }
 0x1f6   : > { %v1023_v22 = vmul.f32 %v1951_v21, %v2337_v42 }
 0x1f8   : > { %1025 = vst [vmem:[%s271_s25] sm:$0xff] %v1023_v22 }
 0x1f9   : > { %v1953_v23 = vpop.eup %1952 }
 0x1fa   : > { %v1024_v24 = vmul.f32 %v1953_v23, %v2341_v46 }
 0x1fc   : > { %v1648_v25 = vpack.c.bf16 %v1024_v24, %v1023_v22  ;;  %1026 = vst [vmem:[%s271_s25 + $0x8] sm:$0xff] %v1024_v24 }
 0x1fe   : > { %1649 = vst [vmem:[#allocation2] sm:$0xff] %v1648_v25  }
 0x205   : > { %v1949_v26 = vld [vmem:[#allocation2] sm:$0xff]  }
 0x206   : > { %1270 = vmatmul.mubr.bf16.vlgmr.msra.gmra.mxu0 %v1949_v26  ;;  %1313 = vmatmul.mubr.bf16.vlgmr.msra.gmra.mxu1 %v1949_v26 }
 0x207   : > { %2047 = shalt.err (!%p2044_p5)
}
 0x208   : > { %s2048_s13 = scalar_lea.hbm %s2352_s24, 256  ;;  %s2052_s25 = scalar_lea.hbm %s2438_s3, 512 }
 0x209   : > { %p2049_p10 = scmp.ne.s32.totalorder %s2352_s24, %s2048_s13  ;;  %p2053_p6 = scmp.lt.s32.totalorder %s2352_s24, %s2438_s3 }
 0x20a   : > { %p2054_p12 = scmp.lt.s32.totalorder %s2052_s25, %s2048_s13 }
 0x20b   : > { %p2050_p1 = pnand %p2049_p10, %p2286_p7 }
 0x20c   : > { %p2055_p3 = por %p2054_p12, %p2053_p6 }
 0x20d   : > { %p2051_p4 = pneg %p2050_p1 }
 0x20f   : > { %p2056_p8 = pnand %p2055_p3, %p2051_p4 }
 0x211   : > { %2059 = shalt.err (!%p2056_p8)
}
 0x212   : > { %s2161_s14 = smov 128   ;;  %s2162_s30 = smov 8  }
 0x213   : > { %1748 = dma.vmem_to_hbm [thread:$0]  (%p2286_p7), %s2354_s21, 256, %s2352_s24, %s1332_s29, %s2161_s14, %s2161_s14, %s2162_s30  }
 0x214   : > { %s278_s8 = scalar_lea.vmem [#allocation10], %s1517_s11  ;;  %s1644_s10 = sshll.u32 %s2140_s18, 10 }
 0x215   : > { %s1369_s6 = sshll.u32 %s278_s8, 4  ;;  %s2387_s21 = scalar_lea.hbm %s2439_s4, %s1644_s10  ;;  %s2382_s6 = int_to_ptr.vmem [resolvable:$true] %s1369_s6 }
 0x216   : > { %s1337_s18 = scalar_lea.sflag [#allocation11], %s2313_s7  ;;  %s2060_s29 = scalar_lea.vmem %s2382_s6, 1024 }
 0x217   : > { %p2061_p9 = scmp.ne.s32.totalorder %s2382_s6, %s2060_s29  ;;  %s2163_s13 = smov [#allocation10]  }
 0x218   : > { %s2064_s22 = sshll.u32 %s2163_s13, 4  ;;  %s2065_s22 = int_to_ptr.vmem [resolvable:$false] %s2064_s22 }
 0x219   : > { %p2062_p11 = pnand %p2061_p9, %p2286_p7  ;;  %s2066_s23 = scalar_lea.vmem %s2065_s22, 2048 }
 0x21a   : > { %p2067_p13 = scmp.lt.s32.totalorder %s2382_s6, %s2065_s22  ;;  %p2068_p0 = scmp.lt.s32.totalorder %s2066_s23, %s2060_s29 }
 0x21b   : > { %p2063_p2 = pneg %p2062_p11 }
 0x21c   : > { %p2069_p5 = por %p2068_p0, %p2067_p13 }
 0x21e   : > { %p2070_p10 = pnand %p2069_p5, %p2063_p2 }
 0x2c6   : > { %v1271_v27 = vpop.f32.mrf.mxu0  ;;  %v1314_v28 = vpop.f32.mrf.mxu1 }
 0x2c7   : > { %1323 = vst [vmem:[%s278_s8] sm:$0xff] %v1271_v27  ;;  %1325 = vst [vmem:[%s278_s8 + $0x10] sm:$0xff] %v1314_v28 }
 0x2c8   : > { %v1273_v29 = vpop.f32.mrf.mxu0  ;;  %v1316_v30 = vpop.f32.mrf.mxu1 }
 0x2c9   : > { %1324 = vst [vmem:[%s278_s8 + $0x8] sm:$0xff] %v1273_v29  ;;  %1326 = vst [vmem:[%s278_s8 + $0x18] sm:$0xff] %v1316_v30 }
 0x2ca   : > { %v1275_v31 = vpop.f32.mrf.mxu0  ;;  %v1318_v32 = vpop.f32.mrf.mxu1 }
 0x2cb   : > { %1327 = vst [vmem:[%s278_s8 + $0x20] sm:$0xff] %v1275_v31  ;;  %1329 = vst [vmem:[%s278_s8 + $0x30] sm:$0xff] %v1318_v32 }
 0x2cc   : > { %v1277_v33 = vpop.f32.mrf.mxu0  ;;  %v1320_v34 = vpop.f32.mrf.mxu1 }
 0x2cd   : > { %1328 = vst [vmem:[%s278_s8 + $0x28] sm:$0xff] %v1277_v33  ;;  %1330 = vst [vmem:[%s278_s8 + $0x38] sm:$0xff] %v1320_v34 }
 0x2ce   : > { %2073 = shalt.err (!%p2070_p10)
}
 0x2cf   : > { %s2074_s25 = scalar_lea.hbm %s2387_s21, 1024  ;;  %s2078_s14 = scalar_lea.hbm %s2439_s4, 2048 }
 0x2d0   : > { %p2075_p1 = scmp.ne.s32.totalorder %s2387_s21, %s2074_s25  ;;  %p2079_p12 = scmp.lt.s32.totalorder %s2387_s21, %s2439_s4 }
 0x2d1   : > { %p2080_p3 = scmp.lt.s32.totalorder %s2078_s14, %s2074_s25 }
 0x2d2   : > { %p2076_p4 = pnand %p2075_p1, %p2286_p7 }
 0x2d3   : > { %p2081_p8 = por %p2080_p3, %p2079_p12 }
 0x2d4   : > { %p2077_p6 = pneg %p2076_p4 }
 0x2d6   : > { %p2082_p9 = pnand %p2081_p8, %p2077_p6 }
 0x2d8   : > { %2085 = shalt.err (!%p2082_p9)
}
 0x2d9   : > { %s2164_s10 = smov 512   ;;  %s2165_s11 = smov 32  }
 0x2da   : > { %1749 = dma.vmem_to_hbm [thread:$0]  (%p2286_p7), %s2382_s6, 1024, %s2387_s21, %s1337_s18, %s2164_s10, %s2164_s10, %s2165_s11  }
 0x2db PF: > { %s1384_s24 = sand.u32 1, %s2128_s15   ;;  %p2453_p11 = scmp.ne.s32.totalorder %s2446_s26, 0 }
 0x2dc   : > { %p2454_p2 = scmp.ge.s32.totalorder %s2148_s20, 2  ;;  %s1385_s29 = scalar_lea.sflag [#allocation5], %s1384_s24 }
 0x2de   : > { %p1764_p13 = pnand %p2454_p2, %p2453_p11 }
 0x2e0   : > { %p1765_p0 = pneg %p1764_p13 }
 0x2e2   : > { %2119 = dma.done.wait (%p1765_p0), %s1385_s29, 256  }
 0x2e3   : > { %2121 = vsyncadd (%p1765_p0), %s1385_s29, 4294967040  ;;  %s1394_s13 = scalar_lea.sflag [#allocation11], %s1384_s24 }
 0x2e4   : > { %2123 = dma.done.wait (%p1765_p0), %s1394_s13, 1024  }
 0x2e5   : > { %2125 = vsyncadd (%p1765_p0), %s1394_s13, 4294966272  ;;  %s25_s20 = sadd.s32 1, %s2148_s20   ;;  %s2455_s15 = smov %s2132_s16 }
 0x2e6   : > { %p22_p5 = scmp.ge.s32.totalorder %s25_s20, 4   ;;  %s2456_s16 = smov %s2136_s17 }
 0x2e7   : > { %s2457_s17 = smov %s2295_s9  ;;  %s2458_s18 = smov %s2144_s19 }
 0x2e8   : > { %s2459_s19 = smov %s2461_s28  ;;  %24 = sbr.rel (!%p22_p5) target bundleno = 9 (0x9), region = 107 }
 0x2ed   :  { %1399 = vsyncpa [#allocation4], 1 }
 0x2ee   :  { %1401 = vsyncpa [#allocation4 + $0x1], 1 }
 0x2ef   :  { %1402 = vsyncpa [#allocation7], 1 }
 0x2f0   :  { %1403 = vsyncpa [#allocation5], 1 }
 0x2f1   :  { %1405 = vsyncpa [#allocation5 + $0x1], 1 }
 0x2f2   :  { %1406 = vsyncpa [#allocation11], 1 }
 0x2f3   :  { %1408 = vsyncpa [#allocation11 + $0x1], 1 }

</bundles_post_ra>
